<compile_context>
chip_gen: v7x
topology: tpu7x:2x2x1
jax: 0.10.0
libtpu: 0.0.40
codegen_flags: <defaults>
</compile_context>

<pallas_src>
import functools

import jax
import jax.numpy as jnp
from jax.experimental import pallas as pl
from jax.experimental.pallas import tpu as pltpu

LANE = 128


def _round_up(x, m):
    return ((x + m - 1) // m) * m


# ----------------------------------------------------------------------------
# Fused kernel: blocked-task MLP forward + softmax + mean CE + accuracy.
# Grid: (num_task_blocks,) — one block of tasks per step, weights VMEM-resident.
# ----------------------------------------------------------------------------
def _fused_maml_query_kernel(labels_ref, x_ref,
                             w1_ref, b1_ref, w2_ref, b2_ref, w3_ref, b3_ref,
                             probs_ref, stats_ref,
                             *, n_classes, tasks_per_blk, batch):
    x = x_ref[...]                                               # (R, Dp) bf16

    # ---- classifier head (bf16 MXU operands, f32 accumulate/elementwise) ----
    h1 = jnp.tanh(
        jnp.dot(x, w1_ref[...], preferred_element_type=jnp.float32)
        + b1_ref[...])
    h2 = jnp.tanh(
        jnp.dot(h1.astype(jnp.bfloat16), w2_ref[...],
                preferred_element_type=jnp.float32)
        + b2_ref[...])
    logits = (jnp.dot(h2.astype(jnp.bfloat16), w3_ref[...],
                      preferred_element_type=jnp.float32)
              + b3_ref[...])                                     # (R, Cp) f32

    R, Cp = logits.shape

    # ---- mask padded class lanes ----
    col = jax.lax.broadcasted_iota(jnp.int32, (R, Cp), 1)        # (R, Cp)
    valid = col < n_classes
    logits = jnp.where(valid, logits, jnp.float32(-1e30))

    # ---- numerically stable softmax (exact divide for F.softmax parity) ----
    m = jnp.max(logits, axis=-1, keepdims=True)                  # (R, 1)
    e = jnp.where(valid, jnp.exp(logits - m), 0.0)               # (R, Cp)
    s = jnp.sum(e, axis=-1, keepdims=True)                       # (R, 1)
    probs_ref[...] = e / s                                       # lane-dense

    # ---- per-row cross-entropy (labels one-hot'ed in-kernel) ----
    lab = labels_ref[...]                                        # (R, 1) int32
    onehot = col == lab
    log_probs = (logits - m) - jnp.log(s)
    ce = -jnp.sum(jnp.where(onehot, log_probs, 0.0),
                  axis=-1, keepdims=True)                        # (R, 1)

    # ---- argmax (first maximal valid class, like torch.argmax) & correctness
    is_max = (logits == m) & valid
    cand = jnp.where(is_max, col, jnp.int32(2**31 - 1))
    preds = jnp.min(cand, axis=-1, keepdims=True)                # (R, 1) int32
    correct = (preds == lab).astype(jnp.float32)                 # (R, 1)

    # ---- per-task reduction via a tiny segment matmul (no reshapes) ----
    # vals: col0 = ce/B, col1 = correct/B, rest 0  -> lane-dense (R, 128)
    lane = jax.lax.broadcasted_iota(jnp.int32, (R, LANE), 1)
    inv_b = jnp.float32(1.0 / batch)
    vals = jnp.where(lane == 0, ce * inv_b,
                     jnp.where(lane == 1, correct * inv_b, 0.0)) # (R, 128)

    # segment matrix: seg[t, r] = 1 iff row r belongs to task t of this block
    row = jax.lax.broadcasted_iota(jnp.int32, (tasks_per_blk, R), 1)
    tid = jax.lax.broadcasted_iota(jnp.int32, (tasks_per_blk, R), 0)
    lower = tid * batch
    seg = ((row >= lower) & (row < lower + batch)).astype(jnp.float32)

    # stats[:, 0] = per-task mean CE, stats[:, 1] = per-task accuracy
    stats_ref[...] = jnp.dot(seg, vals, preferred_element_type=jnp.float32)


# ----------------------------------------------------------------------------
# Batched per-task query evaluation (mirrors the per-task quantities computed
# inside Learner.forward's query block, and the mean-over-tasks it returns).
# ----------------------------------------------------------------------------
def learner_query_eval_batched(q_features, q_labels, params, n_classes):
    """
    q_features : (T, B, encoder_dim) f32  -- predict(meta_model, q_input) per task
    q_labels   : (T, B) int32
    params     : (w1, b1, w2, b2, w3, b3); w_i stored (in, out), b_i (1, out), f32

    Returns (mean_acc, mean_loss, per_task_loss, per_task_acc, probs, preds),
    where (mean_acc, mean_loss) corresponds to (np.mean(task_accs),
    np.mean(task_loss)) from Learner.forward.
    """
    w1, b1, w2, b2, w3, b3 = params
    T, B, D = q_features.shape
    FC = w1.shape[1]
    C = n_classes

    Dp, FCp, Cp = _round_up(D, LANE), _round_up(FC, LANE), _round_up(C, LANE)

    # All tasks in one grid step at these demo sizes; if blocking over tasks,
    # tasks_per_blk * B must stay a multiple of 8 (sublane) and tasks_per_blk a
    # divisor of T.
    tasks_per_blk = T
    num_blocks = T // tasks_per_blk
    R = tasks_per_blk * B

    # Zero-pad lane dims to 128 multiples; padded class lanes masked in-kernel.
    x = jnp.pad(q_features.reshape(T * B, D),
                ((0, 0), (0, Dp - D))).astype(jnp.bfloat16)
    w1p = jnp.pad(w1, ((0, Dp - D), (0, FCp - FC))).astype(jnp.bfloat16)
    b1p = jnp.pad(b1, ((0, 0), (0, FCp - FC)))
    w2p = jnp.pad(w2, ((0, FCp - FC), (0, FCp - FC))).astype(jnp.bfloat16)
    b2p = jnp.pad(b2, ((0, 0), (0, FCp - FC)))
    w3p = jnp.pad(w3, ((0, FCp - FC), (0, Cp - C))).astype(jnp.bfloat16)
    b3p = jnp.pad(b3, ((0, 0), (0, Cp - C)))
    labels = q_labels.reshape(T * B, 1).astype(jnp.int32)

    kernel = functools.partial(_fused_maml_query_kernel,
                               n_classes=C, tasks_per_blk=tasks_per_blk,
                               batch=B)

    def const_spec(shape):
        # Weights/biases: constant block index across the task-block grid axis
        # -> fetched once, VMEM-resident for all task blocks.
        return pl.BlockSpec(shape, lambda t: (0,) * len(shape))

    probs_p, stats = pl.pallas_call(
        kernel,
        out_shape=(
            jax.ShapeDtypeStruct((T * B, Cp), jnp.float32),   # softmax probs
            jax.ShapeDtypeStruct((T, LANE), jnp.float32),     # loss/acc slab
        ),
        grid=(num_blocks,),
        in_specs=[
            pl.BlockSpec((R, 1), lambda t: (t, 0)),           # labels (streamed)
            pl.BlockSpec((R, Dp), lambda t: (t, 0)),          # features (streamed)
            const_spec(w1p.shape), const_spec(b1p.shape),
            const_spec(w2p.shape), const_spec(b2p.shape),
            const_spec(w3p.shape), const_spec(b3p.shape),
        ],
        out_specs=(
            pl.BlockSpec((R, Cp), lambda t: (t, 0)),
            pl.BlockSpec((tasks_per_blk, LANE), lambda t: (t, 0)),
        ),
        compiler_params=pltpu.CompilerParams(
            dimension_semantics=("parallel",)),
    )(labels, x, w1p, b1p, w2p, b2p, w3p, b3p)

    probs = probs_p[:, :C].reshape(T, B, C)
    per_task_loss = stats[:, 0]
    per_task_acc = stats[:, 1]
    preds = jnp.argmax(probs, axis=-1).astype(jnp.int32)         # (T, B)
    mean_acc = jnp.mean(per_task_acc)
    mean_loss = jnp.mean(per_task_loss)
    return mean_acc, mean_loss, per_task_loss, per_task_acc, probs, preds


# ----------------------------------------------------------------------------
# 0.001 * sqrt(sum ||p||^2) regularizer used in the INNER support loss (glue).
# ----------------------------------------------------------------------------
def inner_loss_regularizer(params):
    return 0.001 * jnp.sqrt(sum(jnp.sum(p * p) for p in params))


# ----------------------------------------------------------------------------
# Deterministic parameter init (classifier head from Learner.__init__).
# ----------------------------------------------------------------------------
def init_classifier_params(key, encoder_dim, fc_dim, n_classes):
    ks = jax.random.split(key, 6)

    def linear(kw, kb, fan_in, fan_out):
        bound = 1.0 / jnp.sqrt(fan_in)
        # stored (in, out): transpose of PyTorch nn.Linear weight layout
        w = jax.random.uniform(kw, (fan_in, fan_out), jnp.float32, -bound, bound)
        b = jax.random.uniform(kb, (1, fan_out), jnp.float32, -bound, bound)
        return w, b

    w1, b1 = linear(ks[0], ks[1], encoder_dim, fc_dim)
    w2, b2 = linear(ks[2], ks[3], fc_dim, fc_dim)
    w3, b3 = linear(ks[4], ks[5], fc_dim, n_classes)
    return (w1, b1, w2, b2, w3, b3)


# ----------------------------------------------------------------------------
# Pure-JAX reference (same bf16-operand / f32-accumulate numerics).
# ----------------------------------------------------------------------------
def _reference(q_features, q_labels, params):
    w1, b1, w2, b2, w3, b3 = params
    x = q_features.astype(jnp.bfloat16)
    h1 = jnp.tanh(jnp.einsum('tbd,df->tbf', x, w1.astype(jnp.bfloat16),
                             preferred_element_type=jnp.float32) + b1)
    h2 = jnp.tanh(jnp.einsum('tbf,fg->tbg', h1.astype(jnp.bfloat16),
                             w2.astype(jnp.bfloat16),
                             preferred_element_type=jnp.float32) + b2)
    logits = jnp.einsum('tbg,gc->tbc', h2.astype(jnp.bfloat16),
                        w3.astype(jnp.bfloat16),
                        preferred_element_type=jnp.float32) + b3
    probs = jax.nn.softmax(logits, axis=-1)
    logp = jax.nn.log_softmax(logits, axis=-1)
    onehot = jax.nn.one_hot(q_labels, logits.shape[-1], dtype=jnp.float32)
    per_task_loss = -jnp.mean(jnp.sum(onehot * logp, axis=-1), axis=-1)
    preds = jnp.argmax(logits, axis=-1)
    per_task_acc = jnp.mean((preds == q_labels).astype(jnp.float32), axis=-1)
    return per_task_loss, per_task_acc, probs, preds


if __name__ == "__main__":
    # Small shapes consistent with the module: 4 tasks, each with a query
    # batch of 8 sentences whose encoder produced (B, encoder_dim) features.
    T, B, ENCODER_DIM, FC_DIM, N_CLASSES = 4, 8, 32, 32, 4

    key = jax.random.PRNGKey(0)
    k_feat, k_lab, k_par = jax.random.split(key, 3)

    q_features = jax.random.normal(k_feat, (T, B, ENCODER_DIM), dtype=jnp.float32)
    q_labels = jax.random.randint(k_lab, (T, B), 0, N_CLASSES, dtype=jnp.int32)
    params = init_classifier_params(k_par, ENCODER_DIM, FC_DIM, N_CLASSES)

    (mean_acc, mean_loss, per_task_loss, per_task_acc,
     probs, preds) = learner_query_eval_batched(q_features, q_labels, params,
                                                N_CLASSES)
    jax.block_until_ready((mean_acc, mean_loss, per_task_loss, per_task_acc,
                           probs, preds))

    # Correctness checks vs the bf16-matched pure-JAX reference.
    ref_loss, ref_acc, ref_probs, ref_preds = _reference(q_features, q_labels,
                                                         params)
    assert bool(jnp.all(jnp.isfinite(probs)))
    assert bool(jnp.allclose(jnp.sum(probs, axis=-1), 1.0, atol=1e-5))
    assert bool(jnp.allclose(probs, ref_probs, atol=1e-3, rtol=1e-3))
    assert bool(jnp.allclose(per_task_loss, ref_loss, atol=1e-3, rtol=1e-3))
    assert bool(jnp.allclose(per_task_acc, ref_acc, atol=1e-5))
    assert preds.shape == (T, B)
    assert bool(jnp.all((preds >= 0) & (preds < N_CLASSES)))
    assert bool(jnp.isfinite(mean_loss)) and bool(jnp.isfinite(mean_acc))

    print("KERNEL_OK")
</pallas_src>

<mosaic_0001>
module attributes {stable_mosaic.version = 11 : i64} {
  func.func @_fused_maml_query_kernel(%arg0: i32, %arg1: memref<32x1xi32, #tpu.memory_space<vmem>>, %arg2: memref<32x128xbf16, #tpu.memory_space<vmem>>, %arg3: memref<128x128xbf16, #tpu.memory_space<vmem>>, %arg4: memref<1x128xf32, #tpu.memory_space<vmem>>, %arg5: memref<128x128xbf16, #tpu.memory_space<vmem>>, %arg6: memref<1x128xf32, #tpu.memory_space<vmem>>, %arg7: memref<128x128xbf16, #tpu.memory_space<vmem>>, %arg8: memref<1x128xf32, #tpu.memory_space<vmem>>, %arg9: memref<32x128xf32, #tpu.memory_space<vmem>>, %arg10: memref<4x128xf32, #tpu.memory_space<vmem>>) attributes {dimension_semantics = [#tpu.dimension_semantics<parallel>], iteration_bounds = array<i64: 1>, scalar_prefetch = 0 : i64, scratch_operands = 0 : i64, tpu.core_type = #tpu.core_type<tc>, window_params = [{transform_indices = @transform_0, window_bounds = array<i64: 32, 1>}, {transform_indices = @transform_1, window_bounds = array<i64: 32, 128>}, {pipeline_mode = #tpu.pipeline_mode<synchronous>, transform_indices = @transform_2, window_bounds = array<i64: 128, 128>}, {pipeline_mode = #tpu.pipeline_mode<synchronous>, transform_indices = @transform_3, window_bounds = array<i64: 1, 128>}, {pipeline_mode = #tpu.pipeline_mode<synchronous>, transform_indices = @transform_4, window_bounds = array<i64: 128, 128>}, {pipeline_mode = #tpu.pipeline_mode<synchronous>, transform_indices = @transform_5, window_bounds = array<i64: 1, 128>}, {pipeline_mode = #tpu.pipeline_mode<synchronous>, transform_indices = @transform_6, window_bounds = array<i64: 128, 128>}, {pipeline_mode = #tpu.pipeline_mode<synchronous>, transform_indices = @transform_7, window_bounds = array<i64: 1, 128>}, {transform_indices = @transform_8, window_bounds = array<i64: 32, 128>}, {transform_indices = @transform_9, window_bounds = array<i64: 4, 128>}]} {
    %c0 = arith.constant 0 : index
    %c0_0 = arith.constant 0 : index
    %0 = vector.load %arg2[%c0, %c0_0] : memref<32x128xbf16, #tpu.memory_space<vmem>>, vector<32x128xbf16>
    %c0_1 = arith.constant 0 : index
    %c0_2 = arith.constant 0 : index
    %1 = vector.load %arg3[%c0_1, %c0_2] : memref<128x128xbf16, #tpu.memory_space<vmem>>, vector<128x128xbf16>
    %cst = arith.constant dense<0.000000e+00> : vector<32x128xf32>
    %2 = tpu.matmul %0, %1, %cst {dimension_numbers = #tpu.dot_dimension_numbers<[1], [0], [0], [1], [0, 0, 1, 1], [], []>} : vector<32x128xbf16>, vector<128x128xbf16>, vector<32x128xf32> -> vector<32x128xf32>
    %c0_3 = arith.constant 0 : index
    %c0_4 = arith.constant 0 : index
    %3 = vector.load %arg4[%c0_3, %c0_4] : memref<1x128xf32, #tpu.memory_space<vmem>>, vector<1x128xf32>
    %4 = vector.broadcast %3 : vector<1x128xf32> to vector<32x128xf32>
    %5 = arith.addf %2, %4 : vector<32x128xf32>
    %6 = math.tanh %5 : vector<32x128xf32>
    %7 = arith.truncf %6 : vector<32x128xf32> to vector<32x128xbf16>
    %c0_5 = arith.constant 0 : index
    %c0_6 = arith.constant 0 : index
    %8 = vector.load %arg5[%c0_5, %c0_6] : memref<128x128xbf16, #tpu.memory_space<vmem>>, vector<128x128xbf16>
    %cst_7 = arith.constant dense<0.000000e+00> : vector<32x128xf32>
    %9 = tpu.matmul %7, %8, %cst_7 {dimension_numbers = #tpu.dot_dimension_numbers<[1], [0], [0], [1], [0, 0, 1, 1], [], []>} : vector<32x128xbf16>, vector<128x128xbf16>, vector<32x128xf32> -> vector<32x128xf32>
    %c0_8 = arith.constant 0 : index
    %c0_9 = arith.constant 0 : index
    %10 = vector.load %arg6[%c0_8, %c0_9] : memref<1x128xf32, #tpu.memory_space<vmem>>, vector<1x128xf32>
    %11 = vector.broadcast %10 : vector<1x128xf32> to vector<32x128xf32>
    %12 = arith.addf %9, %11 : vector<32x128xf32>
    %13 = math.tanh %12 : vector<32x128xf32>
    %14 = arith.truncf %13 : vector<32x128xf32> to vector<32x128xbf16>
    %c0_10 = arith.constant 0 : index
    %c0_11 = arith.constant 0 : index
    %15 = vector.load %arg7[%c0_10, %c0_11] : memref<128x128xbf16, #tpu.memory_space<vmem>>, vector<128x128xbf16>
    %cst_12 = arith.constant dense<0.000000e+00> : vector<32x128xf32>
    %16 = tpu.matmul %14, %15, %cst_12 {dimension_numbers = #tpu.dot_dimension_numbers<[1], [0], [0], [1], [0, 0, 1, 1], [], []>} : vector<32x128xbf16>, vector<128x128xbf16>, vector<32x128xf32> -> vector<32x128xf32>
    %c0_13 = arith.constant 0 : index
    %c0_14 = arith.constant 0 : index
    %17 = vector.load %arg8[%c0_13, %c0_14] : memref<1x128xf32, #tpu.memory_space<vmem>>, vector<1x128xf32>
    %18 = vector.broadcast %17 : vector<1x128xf32> to vector<32x128xf32>
    %19 = arith.addf %16, %18 : vector<32x128xf32>
    %20 = tpu.iota {dimensions = array<i32: 1>} : vector<32x128xi32>
    %c4_i32 = arith.constant 4 : i32
    %21 = vector.broadcast %c4_i32 : i32 to vector<32x128xi32>
    %22 = arith.cmpi slt, %20, %21 : vector<32x128xi32>
    %cst_15 = arith.constant -1.000000e+30 : f32
    %23 = vector.broadcast %cst_15 : f32 to vector<32x128xf32>
    %24 = arith.select %22, %19, %23 : vector<32x128xi1>, vector<32x128xf32>
    %cst_16 = arith.constant dense<0xFF800000> : vector<32xf32>
    %25 = vector.multi_reduction <maximumf>, %24, %cst_16 [1] : vector<32x128xf32> to vector<32xf32>
    %26 = vector.shape_cast %25 : vector<32xf32> to vector<32x1xf32>
    %27 = vector.broadcast %26 : vector<32x1xf32> to vector<32x128xf32>
    %28 = arith.subf %24, %27 : vector<32x128xf32>
    %29 = math.exp %28 : vector<32x128xf32>
    %cst_17 = arith.constant 0.000000e+00 : f32
    %30 = vector.broadcast %cst_17 : f32 to vector<32x128xf32>
    %31 = arith.select %22, %29, %30 : vector<32x128xi1>, vector<32x128xf32>
    %cst_18 = arith.constant dense<0.000000e+00> : vector<32xf32>
    %32 = vector.multi_reduction <add>, %31, %cst_18 [1] : vector<32x128xf32> to vector<32xf32>
    %33 = vector.shape_cast %32 : vector<32xf32> to vector<32x1xf32>
    %34 = vector.broadcast %33 : vector<32x1xf32> to vector<32x128xf32>
    %35 = arith.divf %31, %34 : vector<32x128xf32>
    %c0_19 = arith.constant 0 : index
    %c0_20 = arith.constant 0 : index
    %36 = vector.load %arg9[%c0_19, %c0_20] : memref<32x128xf32, #tpu.memory_space<vmem>>, vector<32x128xf32>
    tpu.vector_store %arg9[%c0_19, %c0_20], %35 {strides = array<i32>} : memref<32x128xf32, #tpu.memory_space<vmem>>, vector<32x128xf32>,
    %c0_21 = arith.constant 0 : index
    %c0_22 = arith.constant 0 : index
    %37 = vector.load %arg1[%c0_21, %c0_22] : memref<32x1xi32, #tpu.memory_space<vmem>>, vector<32x1xi32>
    %38 = vector.broadcast %37 : vector<32x1xi32> to vector<32x128xi32>
    %39 = arith.cmpi eq, %20, %38 : vector<32x128xi32>
    %40 = vector.broadcast %26 : vector<32x1xf32> to vector<32x128xf32>
    %41 = arith.subf %24, %40 : vector<32x128xf32>
    %42 = math.log %33 : vector<32x1xf32>
    %43 = vector.broadcast %42 : vector<32x1xf32> to vector<32x128xf32>
    %44 = arith.subf %41, %43 : vector<32x128xf32>
    %cst_23 = arith.constant 0.000000e+00 : f32
    %45 = vector.broadcast %cst_23 : f32 to vector<32x128xf32>
    %46 = arith.select %39, %44, %45 : vector<32x128xi1>, vector<32x128xf32>
    %cst_24 = arith.constant dense<0.000000e+00> : vector<32xf32>
    %47 = vector.multi_reduction <add>, %46, %cst_24 [1] : vector<32x128xf32> to vector<32xf32>
    %48 = vector.shape_cast %47 : vector<32xf32> to vector<32x1xf32>
    %cst_25 = arith.constant 0.000000e+00 : f32
    %49 = vector.broadcast %cst_25 : f32 to vector<32x1xf32>
    %50 = arith.subf %49, %48 : vector<32x1xf32>
    %51 = vector.broadcast %26 : vector<32x1xf32> to vector<32x128xf32>
    %52 = arith.cmpf oeq, %24, %51 : vector<32x128xf32>
    %53 = arith.andi %52, %22 : vector<32x128xi1>
    %c2147483647_i32 = arith.constant 2147483647 : i32
    %54 = vector.broadcast %c2147483647_i32 : i32 to vector<32x128xi32>
    %55 = arith.select %53, %20, %54 : vector<32x128xi1>, vector<32x128xi32>
    %cst_26 = arith.constant dense<2147483647> : vector<32xi32>
    %56 = vector.multi_reduction <minsi>, %55, %cst_26 [1] : vector<32x128xi32> to vector<32xi32>
    %57 = vector.shape_cast %56 : vector<32xi32> to vector<32x1xi32>
    %58 = arith.cmpi eq, %57, %37 : vector<32x1xi32>
    %59 = arith.extui %58 : vector<32x1xi1> to vector<32x1xi32>
    %60 = arith.sitofp %59 : vector<32x1xi32> to vector<32x1xf32>
    %61 = tpu.iota {dimensions = array<i32: 1>} : vector<32x128xi32>
    %c0_i32 = arith.constant 0 : i32
    %62 = vector.broadcast %c0_i32 : i32 to vector<32x128xi32>
    %63 = arith.cmpi eq, %61, %62 : vector<32x128xi32>
    %cst_27 = arith.constant 1.250000e-01 : f32
    %64 = vector.broadcast %cst_27 : f32 to vector<32x1xf32>
    %65 = arith.mulf %50, %64 : vector<32x1xf32>
    %c1_i32 = arith.constant 1 : i32
    %66 = vector.broadcast %c1_i32 : i32 to vector<32x128xi32>
    %67 = arith.cmpi eq, %61, %66 : vector<32x128xi32>
    %cst_28 = arith.constant 1.250000e-01 : f32
    %68 = vector.broadcast %cst_28 : f32 to vector<32x1xf32>
    %69 = arith.mulf %60, %68 : vector<32x1xf32>
    %cst_29 = arith.constant 0.000000e+00 : f32
    %70 = vector.shape_cast %69 : vector<32x1xf32> to vector<32x1xf32>
    %71 = vector.broadcast %70 : vector<32x1xf32> to vector<32x128xf32>
    %72 = vector.broadcast %cst_29 : f32 to vector<32x128xf32>
    %73 = arith.select %67, %71, %72 : vector<32x128xi1>, vector<32x128xf32>
    %74 = vector.shape_cast %65 : vector<32x1xf32> to vector<32x1xf32>
    %75 = vector.broadcast %74 : vector<32x1xf32> to vector<32x128xf32>
    %76 = arith.select %63, %75, %73 : vector<32x128xi1>, vector<32x128xf32>
    %77 = tpu.iota {dimensions = array<i32: 1>} : vector<4x32xi32>
    %78 = tpu.iota {dimensions = array<i32: 0>} : vector<4x32xi32>
    %c8_i32 = arith.constant 8 : i32
    %79 = vector.broadcast %c8_i32 : i32 to vector<4x32xi32>
    %80 = arith.muli %78, %79 : vector<4x32xi32>
    %81 = arith.cmpi sge, %77, %80 : vector<4x32xi32>
    %c8_i32_30 = arith.constant 8 : i32
    %82 = vector.broadcast %c8_i32_30 : i32 to vector<4x32xi32>
    %83 = arith.addi %80, %82 : vector<4x32xi32>
    %84 = arith.cmpi slt, %77, %83 : vector<4x32xi32>
    %85 = arith.andi %81, %84 : vector<4x32xi1>
    %86 = arith.extui %85 : vector<4x32xi1> to vector<4x32xi32>
    %87 = arith.sitofp %86 : vector<4x32xi32> to vector<4x32xf32>
    %cst_31 = arith.constant dense<0.000000e+00> : vector<4x128xf32>
    %88 = tpu.matmul %87, %76, %cst_31 {dimension_numbers = #tpu.dot_dimension_numbers<[1], [0], [0], [1], [0, 0, 1, 1], [], []>} : vector<4x32xf32>, vector<32x128xf32>, vector<4x128xf32> -> vector<4x128xf32>
    %c0_32 = arith.constant 0 : index
    %c0_33 = arith.constant 0 : index
    %89 = vector.load %arg10[%c0_32, %c0_33] : memref<4x128xf32, #tpu.memory_space<vmem>>, vector<4x128xf32>
    tpu.vector_store %arg10[%c0_32, %c0_33], %88 {strides = array<i32>} : memref<4x128xf32, #tpu.memory_space<vmem>>, vector<4x128xf32>,
    return
  }
  func.func @transform_0(%arg0: i32) -> (i32, i32) {
    %c0_i32 = arith.constant 0 : i32
    %c0_i32_0 = arith.constant 0 : i32
    return %arg0, %c0_i32 : i32, i32
  }
  func.func @transform_1(%arg0: i32) -> (i32, i32) {
    %c0_i32 = arith.constant 0 : i32
    %c0_i32_0 = arith.constant 0 : i32
    return %arg0, %c0_i32 : i32, i32
  }
  func.func @transform_2(%arg0: i32) -> (i32, i32) {
    %c0_i32 = arith.constant 0 : i32
    %c0_i32_0 = arith.constant 0 : i32
    %c0_i32_1 = arith.constant 0 : i32
    return %c0_i32, %c0_i32_0 : i32, i32
  }
  func.func @transform_3(%arg0: i32) -> (i32, i32) {
    %c0_i32 = arith.constant 0 : i32
    %c0_i32_0 = arith.constant 0 : i32
    %c0_i32_1 = arith.constant 0 : i32
    return %c0_i32, %c0_i32_0 : i32, i32
  }
  func.func @transform_4(%arg0: i32) -> (i32, i32) {
    %c0_i32 = arith.constant 0 : i32
    %c0_i32_0 = arith.constant 0 : i32
    %c0_i32_1 = arith.constant 0 : i32
    return %c0_i32, %c0_i32_0 : i32, i32
  }
  func.func @transform_5(%arg0: i32) -> (i32, i32) {
    %c0_i32 = arith.constant 0 : i32
    %c0_i32_0 = arith.constant 0 : i32
    %c0_i32_1 = arith.constant 0 : i32
    return %c0_i32, %c0_i32_0 : i32, i32
  }
  func.func @transform_6(%arg0: i32) -> (i32, i32) {
    %c0_i32 = arith.constant 0 : i32
    %c0_i32_0 = arith.constant 0 : i32
    %c0_i32_1 = arith.constant 0 : i32
    return %c0_i32, %c0_i32_0 : i32, i32
  }
  func.func @transform_7(%arg0: i32) -> (i32, i32) {
    %c0_i32 = arith.constant 0 : i32
    %c0_i32_0 = arith.constant 0 : i32
    %c0_i32_1 = arith.constant 0 : i32
    return %c0_i32, %c0_i32_0 : i32, i32
  }
  func.func @transform_8(%arg0: i32) -> (i32, i32) {
    %c0_i32 = arith.constant 0 : i32
    %c0_i32_0 = arith.constant 0 : i32
    return %arg0, %c0_i32 : i32, i32
  }
  func.func @transform_9(%arg0: i32) -> (i32, i32) {
    %c0_i32 = arith.constant 0 : i32
    %c0_i32_0 = arith.constant 0 : i32
    return %arg0, %c0_i32 : i32, i32
  }
}

</mosaic_0001>

<bundles_post_ra>
// kernel: tpu_custom_call.1
= control target key start
LH: loop header
LB: loop body
LE: loop exit
PB: predicated region body
PF: predicated region fallthrough
CT: control target
= control target key end

     0   :  { %15 = vsyncpa [#allocation3], 0  ;;  %s1420_s0 = inlined_call_operand.vmem [shape: s32[32,1], index: 0, kind: input, shape index: {}]   ;;  %s1421_s1 = inlined_call_operand.vmem [shape: bf16[32,128], index: 1, kind: input, shape index: {}]   ;;  %s1422_s2 = inlined_call_operand.hbm [shape: bf16[128,128], index: 2, kind: input, shape index: {}]   ;;  %s1423_s3 = inlined_call_operand.vmem [shape: f32[1,128], index: 3, kind: input, shape index: {}]   ;;  %s1424_s4 = inlined_call_operand.hbm [shape: bf16[128,128], index: 4, kind: input, shape index: {}]   ;;  %s1425_s5 = inlined_call_operand.vmem [shape: f32[1,128], index: 5, kind: input, shape index: {}]   ;;  %s1426_s6 = inlined_call_operand.hbm [shape: bf16[128,128], index: 6, kind: input, shape index: {}]   ;;  %s1427_s7 = inlined_call_operand.vmem [shape: f32[1,128], index: 7, kind: input, shape index: {}]   ;;  %s1428_s8 = inlined_call_operand.hbm [shape: f32[32,128], index: 8, kind: output, shape index: {0}]   ;;  %s1429_s9 = inlined_call_operand.hbm [shape: f32[4,128], index: 9, kind: output, shape index: {1}]  }
   0x1   :  { %16 = vsyncpa [#allocation6], 0 }
   0x2   :  { %17 = vsyncpa [#allocation4], 0 }
   0x3   :  { %18 = vsyncpa [#allocation10], 0  ;;  %s1152_s30 = smov [#allocation5]   ;;  %s1153_s11 = smov [#allocation2]  }
   0x4   :  { %s42_s10 = sshll.u32 %s1152_s30, 4  ;;  %s28_s12 = sshll.u32 %s1153_s11, 4  ;;  %s43_s10 = int_to_ptr.vmem [resolvable:$true] %s42_s10  ;;  %s1215_s12 = int_to_ptr.vmem [resolvable:$true] %s28_s12 }
   0x5   :  { %s1034_s15 = scalar_lea.hbm %s1424_s4, 1024 }
   0x6   :  { %p1035_p0 = scmp.ne.s32.totalorder %s1424_s4, %s1034_s15  ;;  %p1038_p1 = scmp.lt.u32.totalorder %s1034_s15, %s1424_s4 }
   0x8   :  { %p1040_p2 = pnand %p1038_p1, %p1035_p0 }
   0xa   :  { %1043 = shalt.err (!%p1040_p2)
}
   0xb   :  { %s1044_s20 = scalar_lea.vmem %s43_s10, 1024  ;;  %p1049_p4 = scmp.lt.s32.totalorder %s43_s10, %s43_s10 }
   0xc   :  { %p1045_p3 = scmp.ne.s32.totalorder %s43_s10, %s1044_s20  ;;  %p1050_p5 = scmp.lt.s32.totalorder %s1044_s20, %s1044_s20 }
   0xe   :  { %p1051_p6 = por %p1050_p5, %p1049_p4 }
  0x10   :  { %p1052_p7 = pnand %p1051_p6, %p1045_p3 }
  0x12   :  { %1055 = shalt.err (!%p1052_p7)
}
  0x13   :  { %s1154_s21 = smov 64   ;;  %s1155_s22 = smov 4  }
  0x14   :  { %48 = dma.hbm_to_vmem [thread:$0]  %s1424_s4, 1024, %s43_s10, [#allocation6], %s1154_s21, %s1154_s21, %s1155_s22  }
  0x15   :  { %s1056_s27 = scalar_lea.hbm %s1422_s2, 1024 }
  0x16   :  { %p1057_p8 = scmp.ne.s32.totalorder %s1422_s2, %s1056_s27  ;;  %p1060_p9 = scmp.lt.u32.totalorder %s1056_s27, %s1422_s2 }
  0x18   :  { %p1062_p10 = pnand %p1060_p9, %p1057_p8 }
  0x1a   :  { %1065 = shalt.err (!%p1062_p10)
}
  0x1b   :  { %s1066_s13 = scalar_lea.vmem %s1215_s12, 1024  ;;  %p1071_p12 = scmp.lt.s32.totalorder %s1215_s12, %s1215_s12 }
  0x1c   :  { %p1067_p11 = scmp.ne.s32.totalorder %s1215_s12, %s1066_s13  ;;  %p1072_p13 = scmp.lt.s32.totalorder %s1066_s13, %s1066_s13 }
  0x1e   :  { %p1073_p0 = por %p1072_p13, %p1071_p12 }
  0x20   :  { %p1074_p1 = pnand %p1073_p0, %p1067_p11 }
  0x22   :  { %1077 = shalt.err (!%p1074_p1)
}
  0x23   :  { %34 = dma.hbm_to_vmem [thread:$0]  %s1422_s2, 1024, %s1215_s12, [#allocation3], %s1154_s21, %s1154_s21, %s1155_s22  }
  0x24   :  { %s1156_s14 = smov [#allocation7]   ;;  %s1078_s18 = scalar_lea.hbm %s1426_s6, 1024 }
  0x25   :  { %s56_s15 = sshll.u32 %s1156_s14, 4  ;;  %p1079_p2 = scmp.ne.s32.totalorder %s1426_s6, %s1078_s18  ;;  %s57_s15 = int_to_ptr.vmem [resolvable:$true] %s56_s15 }
  0x26   :  { %p1082_p3 = scmp.lt.u32.totalorder %s1078_s18, %s1426_s6 }
  0x28   :  { %p1084_p4 = pnand %p1082_p3, %p1079_p2 }
  0x2a   :  { %1087 = shalt.err (!%p1084_p4)
}
  0x2b   :  { %s1088_s25 = scalar_lea.vmem %s57_s15, 1024  ;;  %p1093_p6 = scmp.lt.s32.totalorder %s57_s15, %s57_s15 }
  0x2c   :  { %p1089_p5 = scmp.ne.s32.totalorder %s57_s15, %s1088_s25  ;;  %p1094_p7 = scmp.lt.s32.totalorder %s1088_s25, %s1088_s25 }
  0x2e   :  { %p1095_p8 = por %p1094_p7, %p1093_p6 }
  0x30   :  { %p1096_p9 = pnand %p1095_p8, %p1089_p5 }
  0x32   :  { %1099 = shalt.err (!%p1096_p9)
}
  0x33   :  { %62 = dma.hbm_to_vmem [thread:$0]  %s1426_s6, 1024, %s57_s15, [#allocation6], %s1154_s21, %s1154_s21, %s1155_s22  }
  0x34   :  { %1144 = dma.done.wait [#allocation3], 1024  }
  0x35   :  { %1145 = vsyncadd [#allocation3], 4294966272 }
  0x36   :  { %1146 = dma.done.wait [#allocation6], 2048  }
  0x37   :  { %1147 = vsyncadd [#allocation6], 4294965248  ;;  %v968_v0 = vld [vmem:[#allocation2] sm:$0xff]   ;;  %v969_v1 = vld [vmem:[#allocation2 + $0x8] sm:$0xff]   ;;  %v463_v56 = vlaneseq }
  0x38   :  { %866 = vmatprep.subr.bf16.mxu0 %v968_v0  ;;  %v970_v2 = vld [vmem:[#allocation2 + $0x10] sm:$0xff]   ;;  %v971_v3 = vld [vmem:[#allocation2 + $0x18] sm:$0xff]   ;;  %v976_v4 = vld [vmem:[%s1421_s1] sm:$0xff]  }
  0x39   :  { %867 = vmatpush3.bf16.msra.mxu0 %v968_v0  ;;  %v972_v5 = vld [vmem:[#allocation2 + $0x20] sm:$0xff]   ;;  %882 = vmatprep.mubr.bf16.mxu0 %v976_v4  ;;  %v979_v7 = vld [vmem:[#allocation5 + $0x8] sm:$0xff]   ;;  %v980_v8 = vld [vmem:[#allocation5 + $0x10] sm:$0xff]   ;;  %v1280_v57 = vand.u32 127, %v463_v56 }
  0x3a   :  { %868 = vmatprep.subr.bf16.mxu0 %v969_v1  ;;  %v978_v6 = vld [vmem:[#allocation5] sm:$0xff]   ;;  %v973_v9 = vld [vmem:[#allocation2 + $0x28] sm:$0xff]   ;;  %v974_v10 = vld [vmem:[#allocation2 + $0x30] sm:$0xff]  }
  0x3b   :  { %886 = vmatprep.subr.bf16.mxu1 %v978_v6  ;;  %v975_v11 = vld [vmem:[#allocation2 + $0x38] sm:$0xff]   ;;  %v977_v12 = vld [vmem:[%s1421_s1 + $0x8] sm:$0xff]   ;;  %v982_v14 = vld [vmem:[#allocation5 + $0x20] sm:$0xff]   ;;  %vm465_vm0 = vcmp.lt.s32.totalorder %v1280_v57, 4 }
  0x3c   :  { %887 = vmatpush3.bf16.msra.mxu1 %v978_v6  ;;  %v981_v13 = vld [vmem:[#allocation5 + $0x18] sm:$0xff]   ;;  %v983_v15 = vld [vmem:[#allocation5 + $0x28] sm:$0xff]   ;;  %v984_v16 = vld [vmem:[#allocation5 + $0x30] sm:$0xff]  }
  0x3d   :  { %869 = vmatpush3.bf16.msra.mxu0 %v969_v1  ;;  %888 = vmatprep.subr.bf16.mxu1 %v979_v7  ;;  %v985_v17 = vld [vmem:[#allocation5 + $0x38] sm:$0xff]   ;;  %v986_v18 = vld [vmem:[#allocation7] sm:$0xff]   ;;  %v987_v19 = vld [vmem:[#allocation7 + $0x8] sm:$0xff]  }
  0x3e   :  { %870 = vmatprep.subr.bf16.mxu0 %v970_v2  ;;  %v988_v20 = vld [vmem:[#allocation7 + $0x10] sm:$0xff]   ;;  %v796_v21 = vld [vmem:[%s1423_s3] ss:$0 sm:$0xff]  ;;  %v989_v36 = vld [vmem:[#allocation7 + $0x18] sm:$0xff]  }
  0x3f   :  { %v990_v37 = vld [vmem:[#allocation7 + $0x20] sm:$0xff]   ;;  %v991_v38 = vld [vmem:[#allocation7 + $0x28] sm:$0xff]   ;;  %v992_v39 = vld [vmem:[#allocation7 + $0x30] sm:$0xff]  }
  0x40   :  { %889 = vmatpush3.bf16.msra.mxu1 %v979_v7  ;;  %v993_v40 = vld [vmem:[#allocation7 + $0x38] sm:$0xff]   ;;  %v807_v41 = vld [vmem:[%s1425_s5] ss:$0 sm:$0xff]  ;;  %v1157_v7 = vmov 0  }
  0x41   :  { %871 = vmatpush3.bf16.msra.mxu0 %v970_v2  ;;  %890 = vmatprep.subr.bf16.mxu1 %v980_v8  ;;  %v816_v58 = vld [vmem:[%s1427_s7] ss:$0 sm:$0xff] }
  0x42   :  { %872 = vmatprep.subr.bf16.mxu0 %v971_v3  ;;  %957 = vset.pattern.permute.xlu1 %v1157_v7 }
  0x43   :  { %956 = vset.pattern.permute.xlu0 %v1157_v7 }
  0x44   :  { %891 = vmatpush3.bf16.msra.mxu1 %v980_v8 }
  0x45   :  { %873 = vmatpush3.bf16.msra.mxu0 %v971_v3  ;;  %892 = vmatprep.subr.bf16.mxu1 %v981_v13 }
  0x46   :  { %874 = vmatprep.subr.bf16.mxu0 %v972_v5 }
  0x48   :  { %893 = vmatpush3.bf16.msra.mxu1 %v981_v13 }
  0x49   :  { %875 = vmatpush3.bf16.msra.mxu0 %v972_v5  ;;  %894 = vmatprep.subr.bf16.mxu1 %v982_v14 }
  0x4a   :  { %876 = vmatprep.subr.bf16.mxu0 %v973_v9 }
  0x4c   :  { %895 = vmatpush3.bf16.msra.mxu1 %v982_v14 }
  0x4d   :  { %877 = vmatpush3.bf16.msra.mxu0 %v973_v9  ;;  %896 = vmatprep.subr.bf16.mxu1 %v983_v15 }
  0x4e   :  { %878 = vmatprep.subr.bf16.mxu0 %v974_v10 }
  0x50   :  { %897 = vmatpush3.bf16.msra.mxu1 %v983_v15 }
  0x51   :  { %879 = vmatpush3.bf16.msra.mxu0 %v974_v10  ;;  %898 = vmatprep.subr.bf16.mxu1 %v984_v16 }
  0x52   :  { %880 = vmatprep.subr.bf16.mxu0 %v975_v11 }
  0x54   :  { %899 = vmatpush3.bf16.msra.mxu1 %v984_v16 }
  0x55   :  { %881 = vmatpush3.bf16.msra.mxu0 %v975_v11  ;;  %900 = vmatprep.subr.bf16.mxu1 %v985_v17 }
  0x56   :  { %906 = vmatprep.subr.bf16.mxu0 %v986_v18 }
  0x58   :  { %883 = vmatmul.mubr.bf16.vlgmr.msra.gmra.mrb[0].mxu0 %v977_v12  ;;  %901 = vmatpush3.bf16.msra.mxu1 %v985_v17 }
  0x59   :  { %907 = vmatpush3.bf16.msra.mxu0 %v986_v18 }
  0x5a   :  { %908 = vmatprep.subr.bf16.mxu0 %v987_v19 }
  0x5d   :  { %909 = vmatpush3.bf16.msra.mxu0 %v987_v19 }
  0x5e   :  { %910 = vmatprep.subr.bf16.mxu0 %v988_v20 }
  0x61   :  { %911 = vmatpush3.bf16.msra.mxu0 %v988_v20 }
  0x62   :  { %912 = vmatprep.subr.bf16.mxu0 %v989_v36 }
  0x65   :  { %913 = vmatpush3.bf16.msra.mxu0 %v989_v36 }
  0x66   :  { %914 = vmatprep.subr.bf16.mxu0 %v990_v37 }
  0x69   :  { %915 = vmatpush3.bf16.msra.mxu0 %v990_v37 }
  0x6a   :  { %916 = vmatprep.subr.bf16.mxu0 %v991_v38 }
  0x6d   :  { %917 = vmatpush3.bf16.msra.mxu0 %v991_v38 }
  0x6e   :  { %918 = vmatprep.subr.bf16.mxu0 %v992_v39 }
  0x71   :  { %919 = vmatpush3.bf16.msra.mxu0 %v992_v39 }
  0x72   :  { %920 = vmatprep.subr.bf16.mxu0 %v993_v40 }
  0x75   :  { %921 = vmatpush3.bf16.msra.mxu0 %v993_v40 }
 0x12b   :  { %v884_v22 = vpop.f32.mrb[0].mxu0 }
 0x12c   :  { %v205_v23 = vadd.f32 %v884_v22, %v796_v21  ;;  %v196_v24 = vpop.f32.mrb[1].mxu0 }
 0x12d   :  { %v197_v25 = vadd.f32 %v796_v21, %v196_v24  ;;  %v885_v26 = vpop.f32.mrb[2].mxu0 }
 0x12e   :  { %994 = vtanh.f32 %v205_v23  ;;  %v208_v27 = vadd.f32 %v885_v26, %v796_v21  ;;  %v199_v28 = vpop.f32.mrb[3].mxu0 }
 0x12f   :  { %996 = vtanh.f32 %v197_v25  ;;  %v200_v29 = vadd.f32 %v796_v21, %v199_v28 }
 0x130   :  { %998 = vtanh.f32 %v208_v27 }
 0x131   :  { %1000 = vtanh.f32 %v200_v29 }
 0x138   :  { %v995_v30 = vpop.eup %994 }
 0x139   :  { %v997_v31 = vpop.eup %996 }
 0x13a   :  { %v999_v32 = vpop.eup %998 }
 0x13b   :  { %v1001_v33 = vpop.eup %1000  ;;  %v216_v34 = vpack.c.bf16 %v999_v32, %v995_v30  ;;  %v1322_v32 = vld [vmem:[%s1420_s0 + $0x8] sm:$0xff] }
 0x13c   :  { %v215_v35 = vpack.c.bf16 %v1001_v33, %v997_v31  ;;  %v1328_v33 = vld [vmem:[%s1420_s0] sm:$0xff] }
 0x13e   :  { %902 = vmatprep.mubr.bf16.mxu1 %v215_v35 }
 0x13f   :  { %903 = vmatmul.mubr.bf16.vlgmr.msra.gmra.mrb[0].mxu1 %v216_v34 }
 0x212   :  { %v904_v42 = vpop.f32.mrb[0].mxu1 }
 0x213   :  { %v331_v43 = vadd.f32 %v904_v42, %v807_v41  ;;  %v322_v44 = vpop.f32.mrb[1].mxu1 }
 0x214   :  { %v323_v45 = vadd.f32 %v807_v41, %v322_v44  ;;  %v905_v46 = vpop.f32.mrb[2].mxu1 }
 0x215   :  { %1002 = vtanh.f32 %v331_v43  ;;  %v334_v47 = vadd.f32 %v905_v46, %v807_v41  ;;  %v325_v48 = vpop.f32.mrb[3].mxu1 }
 0x216   :  { %1004 = vtanh.f32 %v323_v45  ;;  %v326_v49 = vadd.f32 %v807_v41, %v325_v48 }
 0x217   :  { %1006 = vtanh.f32 %v334_v47 }
 0x218   :  { %1008 = vtanh.f32 %v326_v49 }
 0x21f   :  { %v1003_v50 = vpop.eup %1002 }
 0x220   :  { %v1005_v51 = vpop.eup %1004 }
 0x221   :  { %v1007_v52 = vpop.eup %1006 }
 0x222   :  { %v1009_v53 = vpop.eup %1008  ;;  %v342_v54 = vpack.c.bf16 %v1007_v52, %v1003_v50 }
 0x223   :  { %v341_v55 = vpack.c.bf16 %v1009_v53, %v1005_v51 }
 0x225   :  { %922 = vmatprep.mubr.bf16.mxu0 %v341_v55 }
 0x226   :  { %923 = vmatmul.mubr.bf16.vlgmr.msra.gmra.mrb[4].mxu0 %v342_v54 }
 0x2f9   :  { %v924_v59 = vpop.f32.mrb[4].mxu0 }
 0x2fa   :  { %v457_v60 = vadd.f32 %v924_v59, %v816_v58  ;;  %v448_v61 = vpop.f32.mrb[5].mxu0 }
 0x2fb   :  { %v449_v62 = vadd.f32 %v816_v58, %v448_v61  ;;  %v925_v63 = vpop.f32.mrb[6].mxu0 }
 0x2fc   :  { %v460_v0 = vadd.f32 %v925_v63, %v816_v58  ;;  %v451_v1 = vpop.f32.mrb[7].mxu0  ;;  %v468_v2 = vsel %vm465_vm0, %v457_v60, -1e+30  ;;  %v516_v60 = vld [vmem:[%s1420_s0 + $0x10] sm:$0xff] }
 0x2fd   :  { %v452_v3 = vadd.f32 %v816_v58, %v451_v1  ;;  %474 = vmax.xlane.f32.xlu1 %v468_v2  ;;  %v466_v4 = vsel %vm465_vm0, %v449_v62, -1e+30 }
 0x2fe   :  { %470 = vmax.xlane.f32.xlu0 %v466_v4  ;;  %v469_v5 = vsel %vm465_vm0, %v460_v0, -1e+30 }
 0x2ff   :  { %v467_v6 = vsel %vm465_vm0, %v452_v3, -1e+30 }
 0x301   :  { %476 = vmax.xlane.f32.xlu1 %v469_v5 }
 0x302   :  { %472 = vmax.xlane.f32.xlu0 %v467_v6 }
 0x38a   :  { %v475_v8 = vpop.xlane.xlu1 %474 }
 0x38b   :  { %v1294_v9 = vsub.f32 %v468_v2, %v475_v8  ;;  %vm564_vm1 = vcmp.eq.f32.partialorder %v468_v2, %v475_v8  ;;  %v471_v10 = vpop.xlane.xlu0 %470  ;;  %v517_v8 = vld [vmem:[%s1420_s0 + $0x18] sm:$0xff]  ;;  %s1161_s0 = smov [#allocation8]  }
 0x38c   :  { %vm568_vm2 = vmand %vm564_vm1, %vm465_vm0  ;;  %v1298_v11 = vsub.f32 %v466_v4, %v471_v10  ;;  %vm562_vm3 = vcmp.eq.f32.partialorder %v466_v4, %v471_v10  ;;  %s769_s16 = sshll.u32 %s1161_s0, 4  ;;  %s770_s16 = int_to_ptr.vmem [resolvable:$true] %s769_s16 }
 0x38d   :  { %v486_v12 = vmul.f32 1.442695, %v1294_v9  ;;  %vm566_vm4 = vmand %vm562_vm3, %vm465_vm0  ;;  %v572_v16 = vsel %vm568_vm2, %v1280_v57, 2147483647  ;;  %s1100_s17 = scalar_lea.vmem %s770_s16, 512  ;;  %p1105_p11 = scmp.lt.s32.totalorder %s770_s16, %s770_s16 }
 0x38e   :  { %v482_v13 = vmul.f32 1.442695, %v1298_v11  ;;  %v477_v14 = vpop.xlane.xlu1 %476  ;;  %v570_v15 = vsel %vm566_vm4, %v1280_v57, 2147483647  ;;  %v603_v21 = vshra.s32 %v572_v16, 16  ;;  %v602_v46 = vand.u32 65535, %v572_v16  ;;  %p1101_p10 = scmp.ne.s32.totalorder %s770_s16, %s1100_s17  ;;  %p1106_p12 = scmp.lt.s32.totalorder %s1100_s17, %s1100_s17 }
 0x38f   :  { %1010 = vpow2.f32 %v486_v12  ;;  %vm565_vm5 = vcmp.eq.f32.partialorder %v469_v5, %v477_v14  ;;  %v473_v17 = vpop.xlane.xlu0 %472  ;;  %v575_v18 = vshra.s32 %v570_v15, 16  ;;  %v1331_v34 = vsub.f32 %v469_v5, %v477_v14 }
 0x390   :  { %vm569_vm6 = vmand %vm565_vm5, %vm465_vm0  ;;  %vm563_vm7 = vcmp.eq.f32.partialorder %v467_v6, %v473_v17  ;;  %1012 = vpow2.f32 %v482_v13  ;;  %v605_v26 = vcvt.s32.f32 %v603_v21  ;;  %v1334_v36 = vsub.f32 %v467_v6, %v473_v17  ;;  %p1107_p13 = por %p1106_p12, %p1105_p11 }
 0x391   :  { %vm567_vm8 = vmand %vm563_vm7, %vm465_vm0  ;;  %v577_v19 = vcvt.s32.f32 %v575_v18  ;;  %v573_v20 = vsel %vm569_vm6, %v1280_v57, 2147483647  ;;  %v488_v35 = vmul.f32 1.442695, %v1331_v34  ;;  %v574_v42 = vand.u32 65535, %v570_v15 }
 0x392   :  { %v617_v22 = vshra.s32 %v573_v20, 16  ;;  %v1312_v23 = vsel %vm567_vm8, %v1280_v57, 2147483647  ;;  %v484_v37 = vmul.f32 1.442695, %v1334_v36  ;;  %v616_v43 = vand.u32 65535, %v573_v20  ;;  %p1108_p0 = pnand %p1107_p13, %p1101_p10 }
 0x393   :  { %578 = vmin.xlane.f32.xlu0 %v577_v19  ;;  %v589_v25 = vshra.s32 %v1312_v23, 16  ;;  %1014 = vpow2.f32 %v488_v35  ;;  %v576_v45 = vcvt.s32.f32 %v574_v42  ;;  %v604_v51 = vcvt.s32.f32 %v602_v46 }
 0x394   :  { %v619_v24 = vcvt.s32.f32 %v617_v22  ;;  %1016 = vpow2.f32 %v484_v37  ;;  %v618_v49 = vcvt.s32.f32 %v616_v43  ;;  %v588_v0 = vand.u32 65535, %v1312_v23 }
 0x395   :  { %v591_v27 = vcvt.s32.f32 %v589_v25  ;;  %v1158_v35 = vmov 0.0   ;;  %vm1160_vm5 = vmmov 0   ;;  %vm647_vm6 = vcmp.eq.s32.totalorder %v1280_v57, 1 }
 0x396   :  { %620 = vmin.xlane.f32.xlu1 %v619_v24  ;;  %v590_v2 = vcvt.s32.f32 %v588_v0  ;;  %934 = vmatprep.mubr.msk.f32.mxu1 %vm1160_vm5, %v1158_v35  ;;  %vm642_vm7 = vcmp.eq.s32.totalorder %v1280_v57, 0 }
 0x397   :  { %606 = vmin.xlane.f32.xlu0 %v605_v26 }
 0x399   :  { %v1011_v28 = vpop.eup %1010 }
 0x39a   :  { %592 = vmin.xlane.f32.xlu1 %v591_v27  ;;  %v492_v29 = vsel %vm465_vm0, %v1011_v28, 0.0  ;;  %v1013_v30 = vpop.eup %1012 }
 0x39b   :  { %498 = vadd.xlane.f32.xlu0 %v492_v29  ;;  %v490_v31 = vsel %vm465_vm0, %v1013_v30, 0.0 }
 0x39d   :  { %v1015_v38 = vpop.eup %1014 }
 0x39e   :  { %v493_v39 = vsel %vm465_vm0, %v1015_v38, 0.0  ;;  %v1017_v40 = vpop.eup %1016 }
 0x39f   :  { %494 = vadd.xlane.f32.xlu0 %v490_v31  ;;  %v491_v41 = vsel %vm465_vm0, %v1017_v40, 0.0 }
 0x3ab   :  { %522 = vperm.xlu1 %957, %v1322_v32  }
 0x3b5   :  { %519 = vperm.xlu0 %956, %v1328_v33  }
 0x3cf   :  { %500 = vadd.xlane.f32.xlu1 %v493_v39 }
 0x3d3   :  { %496 = vadd.xlane.f32.xlu1 %v491_v41 }
 0x420   :  { %v1341_v44 = vpop.xlane.xlu0 %578 }
 0x421   :  { %vm580_vm9 = vcmp.eq.f32.partialorder %v577_v19, %v1341_v44  ;;  %v585_v43 = vcvt.f32.s32 %v1341_v44 }
 0x422   :  { %v581_v47 = vsel %vm580_vm9, %v576_v45, inf }
 0x423   :  { %v621_v48 = vpop.xlane.xlu1 %620  ;;  %582 = vmin.xlane.f32.xlu0 %v581_v47 }
 0x424   :  { %v607_v50 = vpop.xlane.xlu0 %606  ;;  %vm622_vm10 = vcmp.eq.f32.partialorder %v619_v24, %v621_v48  ;;  %v627_v20 = vcvt.f32.s32 %v621_v48 }
 0x425   :  { %v623_v52 = vsel %vm622_vm10, %v618_v49, inf  ;;  %vm608_vm11 = vcmp.eq.f32.partialorder %v605_v26, %v607_v50  ;;  %v613_v21 = vcvt.f32.s32 %v607_v50 }
 0x426   :  { %v609_v53 = vsel %vm608_vm11, %v604_v51, inf  ;;  %v628_v25 = vshll.u32 %v627_v20, 16  ;;  %vm689_vm11 = vcmask 261120  }
 0x427   :  { %624 = vmin.xlane.f32.xlu0 %v623_v52  ;;  %610 = vmin.xlane.f32.xlu1 %v609_v53  ;;  %v1347_v63 = vpop.xlane.xlu1 %592  ;;  %v614_v26 = vshll.u32 %v613_v21, 16 }
 0x428   :  { %v499_v54 = vpop.xlane.xlu0 %498  ;;  %vm594_vm12 = vcmp.eq.f32.partialorder %v591_v27, %v1347_v63  ;;  %v599_v47 = vcvt.f32.s32 %v1347_v63 }
 0x429   :  { %1018 = vrcp.f32 %v499_v54  ;;  %v595_v3 = vsel %vm594_vm12, %v590_v2, inf }
 0x42a   :  { %v600_v52 = vshll.u32 %v599_v47, 16 }
 0x42b   :  { %v1350_v1 = vpop.permute.xlu1 %522 }
 0x42c   :  { %v495_v55 = vpop.xlane.xlu0 %494  ;;  %vm531_vm4 = vcmp.eq.s32.totalorder %v1280_v57, %v1350_v1 }
 0x42d   :  { %1020 = vrcp.f32 %v495_v55 }
 0x433   :  { %v1019_v58 = vpop.eup %1018 }
 0x434   :  { %v507_v59 = vmul.f32 %v1019_v58, %v492_v29  ;;  %v520_v15 = vpop.permute.xlu0 %519 }
 0x435   :  { %vm530_vm13 = vcmp.eq.s32.totalorder %v1280_v57, %v520_v15 }
 0x436   :  { %512 = vst [vmem:[#allocation8 + $0x10] sm:$0xff] %v507_v59 }
 0x437   :  { %v1021_v61 = vpop.eup %1020 }
 0x438   :  { %v503_v62 = vmul.f32 %v1021_v61, %v490_v31  ;;  %525 = vperm.xlu1 %957, %v516_v60  }
 0x43a   :  { %510 = vst [vmem:[#allocation8] sm:$0xff] %v503_v62 }
 0x45c   :  { %v501_v4 = vpop.xlane.xlu1 %500  ;;  %596 = vmin.xlane.f32.xlu1 %v595_v3 }
 0x45d   :  { %1022 = vrcp.f32 %v501_v4 }
 0x460   :  { %v497_v5 = vpop.xlane.xlu1 %496 }
 0x461   :  { %1024 = vrcp.f32 %v497_v5 }
 0x462   :  { %1026 = vlog2.f32 %v495_v55 }
 0x463   :  { %1028 = vlog2.f32 %v499_v54 }
 0x464   :  { %1030 = vlog2.f32 %v501_v4 }
 0x465   :  { %1032 = vlog2.f32 %v497_v5 }
 0x467   :  { %v1023_v6 = vpop.eup %1022 }
 0x468   :  { %v509_v7 = vmul.f32 %v1023_v6, %v493_v39 }
 0x46a   :  { %513 = vst [vmem:[#allocation8 + $0x18] sm:$0xff] %v509_v7 }
 0x46b   :  { %v1025_v10 = vpop.eup %1024 }
 0x46c   :  { %v505_v12 = vmul.f32 %v1025_v10, %v491_v41  ;;  %v1027_v13 = vpop.eup %1026 }
 0x46d   :  { %528 = vperm.xlu1 %957, %v517_v8   ;;  %v535_v14 = vmul.f32 0.6931472, %v1027_v13  ;;  %v1029_v19 = vpop.eup %1028 }
 0x46e   :  { %511 = vst [vmem:[#allocation8 + $0x8] sm:$0xff] %v505_v12  ;;  %v539_v24 = vmul.f32 0.6931472, %v1029_v19  ;;  %v1031_v46 = vpop.eup %1030 }
 0x46f   :  { %v542_v16 = vsub.f32 %v1298_v11, %v535_v14  ;;  %v1033_v49 = vpop.eup %1032  ;;  %v541_v51 = vmul.f32 0.6931472, %v1031_v46 }
 0x470   :  { %v544_v11 = vsub.f32 %v1294_v9, %v539_v24  ;;  %v586_v9 = vshll.u32 %v585_v43, 16  ;;  %v537_v54 = vmul.f32 0.6931472, %v1033_v49 }
 0x471   :  { %v546_v17 = vsel %vm530_vm13, %v542_v16, 0.0  ;;  %v545_v44 = vsub.f32 %v1331_v34, %v541_v51  ;;  %v1159_v34 = vmov 0.0|0.0  }
 0x472   :  { %v543_v62 = vsub.f32 %v1334_v36, %v537_v54  ;;  %937 = vmatprep.subr.bf16.mxu1 %v1159_v34  ;;  %v681_v36 = vshrl.u32 %v463_v56, 7 }
 0x474   :  { %v547_v2 = vsel %vm531_vm4, %v543_v62, 0.0  ;;  %v682_v1 = vmul.u32 8, %v681_v36 }
 0x476   :  { %v684_v13 = vadd.s32 8, %v682_v1  ;;  %vm683_vm8 = vcmp.ge.s32.totalorder %v1280_v57, %v682_v1 }
 0x478   :  { %vm685_vm9 = vcmp.lt.s32.totalorder %v1280_v57, %v684_v13 }
 0x479   :  { %vm686_vm10 = vmand %vm683_vm8, %vm685_vm9 }
 0x491   :  { %550 = vadd.xlane.f32.xlu1 %v546_v17 }
 0x4b0   :  { %v583_v18 = vpop.xlane.xlu0 %582 }
 0x4b1   :  { %v584_v45 = vcvt.f32.s32 %v583_v18 }
 0x4b3   :  { %v587_v48 = vadd.s32 %v586_v9, %v584_v45 }
 0x4b4   :  { %v611_v22 = vpop.xlane.xlu1 %610  ;;  %v625_v23 = vpop.xlane.xlu0 %624 }
 0x4b5   :  { %v612_v27 = vcvt.f32.s32 %v611_v22  ;;  %v626_v28 = vcvt.f32.s32 %v625_v23  ;;  %vm630_vm1 = vcmp.eq.s32.totalorder %v587_v48, %v1328_v33 }
 0x4b6   :  { %v825_v58 = vsel %vm630_vm1, 1.0, %v1158_v35 }
 0x4b7   :  { %v615_v29 = vadd.s32 %v614_v26, %v612_v27  ;;  %v629_v30 = vadd.s32 %v628_v25, %v626_v28  ;;  %v648_v33 = vmul.f32 0.125, %v825_v58 }
 0x4b8   :  { %v526_v31 = vpop.permute.xlu1 %525 }
 0x4b9   :  { %vm632_vm14 = vcmp.eq.s32.totalorder %v615_v29, %v516_v60  ;;  %vm633_vm15 = vcmp.eq.s32.totalorder %v629_v30, %v517_v8  ;;  %vm532_vm0 = vcmp.eq.s32.totalorder %v1280_v57, %v526_v31 }
 0x4ba   :  { %v827_v37 = vsel %vm632_vm14, 1.0, %v1158_v35  ;;  %v828_v38 = vsel %vm633_vm15, 1.0, %v1158_v35  ;;  %v548_v39 = vsel %vm532_vm0, %v544_v11, 0.0  ;;  %v829_v11 = vsel %vm686_vm10, 1.0, %v1158_v35 }
 0x4bb   :  { %v650_v40 = vmul.f32 0.125, %v827_v37  ;;  %v651_v41 = vmul.f32 0.125, %v828_v38  ;;  %554 = vadd.xlane.f32.xlu0 %v548_v39 }
 0x4bd   :  { %v963_v42 = vpack.i.bf16 %v651_v41, %v650_v40 }
 0x4e9   :  { %v597_v50 = vpop.xlane.xlu1 %596 }
 0x4ea   :  { %v598_v53 = vcvt.f32.s32 %v597_v50 }
 0x4ec   :  { %v601_v55 = vadd.s32 %v600_v52, %v598_v53 }
 0x4ed   :  { %v529_v59 = vpop.permute.xlu1 %528 }
 0x4ee   :  { %vm631_vm2 = vcmp.eq.s32.totalorder %v601_v55, %v1322_v32  ;;  %vm533_vm3 = vcmp.eq.s32.totalorder %v1280_v57, %v529_v59 }
 0x4ef   :  { %v826_v60 = vsel %vm631_vm2, 1.0, %v1158_v35  ;;  %v549_v61 = vsel %vm533_vm3, %v545_v44, 0.0 }
 0x4f0   :  { %v649_v63 = vmul.f32 0.125, %v826_v60  ;;  %556 = vadd.xlane.f32.xlu0 %v549_v61 }
 0x4f2   :  { %v958_v0 = vpack.i.bf16 %v649_v63, %v648_v33 }
 0x4f4   :  { %552 = vadd.xlane.f32.xlu0 %v547_v2 }
 0x50a   :  { %959 = vperm.xlu0 %956, %v958_v0  }
 0x50e   :  { %964 = vperm.xlu0 %956, %v963_v42  }
 0x51e   :  { %v551_v4 = vpop.xlane.xlu1 %550 }
 0x51f   :  { %v558_v6 = vsub.f32 0.0, %v551_v4 }
 0x521   :  { %v643_v14 = vmul.f32 0.125, %v558_v6 }
 0x548   :  { %v555_v32 = vpop.xlane.xlu0 %554 }
 0x549   :  { %v560_v15 = vsub.f32 0.0, %v555_v32 }
 0x54b   :  { %v645_v25 = vmul.f32 0.125, %v560_v15 }
 0x57d   :  { %v557_v3 = vpop.xlane.xlu0 %556 }
 0x57e   :  { %v561_v16 = vsub.f32 0.0, %v557_v3 }
 0x580   :  { %v646_v26 = vmul.f32 0.125, %v561_v16 }
 0x581   :  { %v553_v5 = vpop.xlane.xlu0 %552 }
 0x582   :  { %v559_v7 = vsub.f32 0.0, %v553_v5 }
 0x584   :  { %v644_v17 = vmul.f32 0.125, %v559_v7 }
 0x589   :  { %v960_v8 = vpop.permute.xlu0 %959 }
 0x58a   :  { %v962_v10 = vunpack.i.h.bf16 %v960_v8  ;;  %v961_v12 = vunpack.i.l.bf16 %v960_v8 }
 0x58c   :  { %v673_v56 = vsel %vm647_vm6, %v962_v10, 0.0  ;;  %v672_v18 = vsel %vm647_vm6, %v961_v12, 0.0 }
 0x58d   :  { %v677_v19 = vsel %vm642_vm7, %v644_v17, %v673_v56  ;;  %v676_v20 = vsel %vm642_vm7, %v643_v14, %v672_v18  ;;  %v965_v21 = vpop.permute.xlu0 %964 }
 0x58e   :  { %v938_v22 = vpack.c.bf16 %v677_v19, %v676_v20  ;;  %v967_v23 = vunpack.i.h.bf16 %v965_v21  ;;  %v966_v24 = vunpack.i.l.bf16 %v965_v21 }
 0x590   :  { %v675_v27 = vsel %vm647_vm6, %v967_v23, 0.0  ;;  %v674_v28 = vsel %vm647_vm6, %v966_v24, 0.0  ;;  %939 = vmatpush3.bf16.msra.mxu1 %v938_v22 }
 0x591   :  { %v679_v29 = vsel %vm642_vm7, %v646_v26, %v675_v27  ;;  %v678_v30 = vsel %vm642_vm7, %v645_v25, %v674_v28  ;;  %940 = vmatprep.subr.bf16.mxu1 %v1159_v34 }
 0x592   :  { %v941_v31 = vpack.c.bf16 %v679_v29, %v678_v30 }
 0x594   :  { %942 = vmatpush3.bf16.msra.mxu1 %v941_v31 }
 0x597   :  { %935 = vmatmul.mubr.msk.f32.vlgmr.msra.gmra.mrb[4].mxu1 %vm689_vm11, %v829_v11 }
 0x598   :  { %1111 = shalt.err (!%p1108_p0)
}
 0x599   :  { %s1112_s20 = scalar_lea.hbm %s1428_s8, 512 }
 0x59a   :  { %p1113_p1 = scmp.ne.s32.totalorder %s1428_s8, %s1112_s20  ;;  %p1116_p2 = scmp.lt.u32.totalorder %s1112_s20, %s1428_s8 }
 0x59c   :  { %p1118_p3 = pnand %p1116_p2, %p1113_p1 }
 0x59e   :  { %1121 = shalt.err (!%p1118_p3)
}
 0x59f   :  { %s1162_s12 = smov 128   ;;  %s1163_s26 = smov 8  }
 0x5a0   :  { %775 = dma.vmem_to_hbm [thread:$0]  %s770_s16, 512, %s1428_s8, [#allocation4], %s1162_s12, %s1162_s12, %s1163_s26  }
 0x5a1   :  { %s1164_s21 = smov [#allocation9]  }
 0x5a2   :  { %s782_s1 = sshll.u32 %s1164_s21, 4  ;;  %s783_s1 = int_to_ptr.vmem [resolvable:$true] %s782_s1 }
 0x5a3   :  { %s1122_s22 = scalar_lea.vmem %s783_s1, 64  ;;  %p1127_p5 = scmp.lt.s32.totalorder %s783_s1, %s783_s1 }
 0x5a4   :  { %p1123_p4 = scmp.ne.s32.totalorder %s783_s1, %s1122_s22  ;;  %p1128_p6 = scmp.lt.s32.totalorder %s1122_s22, %s1122_s22 }
 0x5a6   :  { %p1129_p7 = por %p1128_p6, %p1127_p5 }
 0x5a8   :  { %p1130_p8 = pnand %p1129_p7, %p1123_p4 }
 0x66a   :  { %v759_v57 = vpop.f32.mrb[4].mxu1 }
 0x66b   :  { %763 = vst [vmem:[#allocation9] sm:$0xf] %v759_v57  ;;  %v936_v35 = vpop.f32.mrb[5].mxu1 }
 0x66c   :  { %1133 = shalt.err (!%p1130_p8)
}
 0x66d   :  { %s1134_s5 = scalar_lea.hbm %s1429_s9, 64 }
 0x66e   :  { %p1135_p9 = scmp.ne.s32.totalorder %s1429_s9, %s1134_s5  ;;  %p1138_p10 = scmp.lt.u32.totalorder %s1134_s5, %s1429_s9 }
 0x670   :  { %p1140_p11 = pnand %p1138_p10, %p1135_p9 }
 0x672   :  { %1143 = shalt.err (!%p1140_p11)
}
 0x673   :  { %785 = dma.vmem_to_hbm [thread:$0]  %s783_s1, 64, %s1429_s9, [#allocation10]  }
 0x674   :  { %1148 = dma.done.wait [#allocation4], 512  }
 0x675   :  { %1149 = vsyncadd [#allocation4], 4294966784 }
 0x676   :  { %1150 = dma.done.wait [#allocation10], 64  }
 0x677   :  { %1151 = vsyncadd [#allocation10], 4294967232 }
 0x678   :  { %792 = vsyncpa [#allocation3], 1 }
 0x679   :  { %793 = vsyncpa [#allocation6], 1 }
 0x67a   :  { %794 = vsyncpa [#allocation4], 1 }
 0x67b   :  { %795 = vsyncpa [#allocation10], 1 }

</bundles_post_ra>
